<compile_context>
chip_gen: v6e
topology: v6e:2x2x1
jax: 0.10.0
libtpu: 0.0.40
codegen_flags: <defaults>
</compile_context>

<pallas_src>
import math

import jax
import jax.numpy as jnp
from jax.experimental import pallas as pl
from jax.experimental.pallas import tpu as pltpu


def _ceil_to(x, m):
    return ((x + m - 1) // m) * m


def _vmem_limit_bytes():
    """Generation-aware scoped-VMEM limit (leave headroom for double buffers)."""
    cap = None
    try:
        info = pltpu.get_tpu_info()
        cap = getattr(info, "vmem_capacity_bytes", None)
    except Exception:
        cap = None
    if not cap:
        cap = 64 * 1024 * 1024  # conservative: v7x per-TensorCore VMEM
    return int(cap) * 3 // 4    # ~48 MiB on v7x, ~96 MiB on v5e/v6e


def _tiles(n, dst_tile, src_tile):
    """Pick (tm, tk, n_pad): tm | tk, tk % 128 == 0, n_pad % tk == 0."""
    assert dst_tile % 128 == 0, "dst_tile must be a multiple of 128"
    assert src_tile % dst_tile == 0, "src_tile must be a multiple of dst_tile"
    n_pad = _ceil_to(n, 128)
    if n_pad <= 2 * dst_tile:
        # Small graph: no extra padding, but keep >=2 dst tiles when possible
        # so the "parallel" axis balances across both v7x TensorCores.
        tm = 128
        while (tm * 2 <= dst_tile and n_pad % (tm * 2) == 0
               and n_pad // (tm * 2) >= 2):
            tm *= 2
        return tm, n_pad, n_pad
    tm = dst_tile
    n_pad = _ceil_to(n_pad, tm)
    tk = tm
    for cand in range(src_tile, tm - 1, -tm):   # largest tk<=src_tile, tk|n_pad
        if n_pad % cand == 0:
            tk = cand
            break
    return tm, tk, n_pad


def prepare_adjacency(adj, *, dst_tile=512, src_tile=2048):
    """Pad A[dst, src] to the tile grid and cast to bf16 ({0,1} exact).

    Hoist this out of the per-layer hot path: the padded bf16 adjacency can be
    cached and reused across layers / training steps.
    """
    n = adj.shape[0]
    _, _, n_pad = _tiles(n, dst_tile, src_tile)
    return jnp.pad(adj.astype(jnp.bfloat16), ((0, n_pad - n), (0, n_pad - n)))


# --------------------------------------------------------------------------
# Kernel 1: projection   msg = (H @ W) * norm_src   (computed once, bf16 out)
# --------------------------------------------------------------------------
def _proj_kernel(h_ref, w_ref, norm_ref, msg_ref):
    xw = jnp.dot(h_ref[...], w_ref[...], preferred_element_type=jnp.float32)
    msg_ref[...] = (xw * norm_ref[...]).astype(msg_ref.dtype)


# --------------------------------------------------------------------------
# Kernel 2: aggregation  out = relu((A @ msg) * norm_dst + bias)
#   grid = (dst tiles, src tiles); src reduction is the last ("arbitrary")
#   axis; accumulation goes directly into the resident f32 output block.
# --------------------------------------------------------------------------
def _agg_kernel_resident(adj_ref, msg_ref, norm_ref, bias_ref, out_ref):
    # msg is fully VMEM-resident (block index constant => loaded once).
    k = pl.program_id(1)
    tk = adj_ref.shape[1]

    @pl.when(k == 0)
    def _():
        out_ref[...] = jnp.zeros_like(out_ref)

    src0 = pl.multiple_of(k * tk, 128)
    out_ref[...] += jnp.dot(adj_ref[...], msg_ref[pl.ds(src0, tk), :],
                            preferred_element_type=jnp.float32)

    @pl.when(k == pl.num_programs(1) - 1)
    def _():
        out_ref[...] = jnp.maximum(
            out_ref[...] * norm_ref[...] + bias_ref[...], 0.0)


def _agg_kernel_tiled(adj_ref, msg_ref, norm_ref, bias_ref, out_ref):
    # Fallback when msg does not fit VMEM: msg streamed per src tile.
    k = pl.program_id(1)

    @pl.when(k == 0)
    def _():
        out_ref[...] = jnp.zeros_like(out_ref)

    out_ref[...] += jnp.dot(adj_ref[...], msg_ref[...],
                            preferred_element_type=jnp.float32)

    @pl.when(k == pl.num_programs(1) - 1)
    def _():
        out_ref[...] = jnp.maximum(
            out_ref[...] * norm_ref[...] + bias_ref[...], 0.0)


def gcn_layer_forward(h, weight, adj, norm, bias, *,
                      dst_tile=512, src_tile=2048, msg_resident=None):
    """Fused GCN layer: relu(diag(norm) @ A @ diag(norm) @ (h @ W) + bias).

    `adj` may be the raw (n, n) adjacency (any float dtype) or the output of
    prepare_adjacency() (pre-padded bf16), in which case the expensive N^2
    pad/cast is skipped.
    """
    n, in_feats = h.shape
    out_feats = weight.shape[1]

    tm, tk, n_pad = _tiles(n, dst_tile, src_tile)
    f_pad = _ceil_to(out_feats, 128)  # lane-dense output / msg columns
    vmem_limit = _vmem_limit_bytes()

    # bf16 inputs halve the projection HBM read; accumulation stays f32.
    h_p = jnp.pad(h.astype(jnp.bfloat16), ((0, n_pad - n), (0, 0)))
    w_p = jnp.pad(weight.astype(jnp.bfloat16),
                  ((0, 0), (0, f_pad - out_feats)))
    norm_p = jnp.pad(norm.astype(jnp.float32), ((0, n_pad - n), (0, 0)))
    bias_p = jnp.pad(bias.astype(jnp.float32),
                     ((0, 0), (0, f_pad - out_feats)))

    # Reuse a pre-padded bf16 adjacency if the caller hoisted it; otherwise
    # pad/cast here (correct, but ~3x the kernel's own A traffic).
    if adj.dtype == jnp.bfloat16 and adj.shape == (n_pad, n_pad):
        adj_p = adj
    else:
        adj_p = prepare_adjacency(adj, dst_tile=dst_tile, src_tile=src_tile)

    # ---- projection: msg = (H @ W) * norm_src, emitted once in bf16 --------
    # Row tile decoupled from dst_tile (projection is cheap; amortize step
    # overhead with big rows), capped by the VMEM budget.
    pm = 128
    for cand in (4096, 2048, 1024, 512, 256):
        step_bytes = 2 * cand * (in_feats * 2 + f_pad * 2 + 4)  # dbl-buffered
        if n_pad % cand == 0 and step_bytes <= vmem_limit // 4:
            pm = cand
            break

    msg = pl.pallas_call(
        _proj_kernel,
        out_shape=jax.ShapeDtypeStruct((n_pad, f_pad), jnp.bfloat16),
        grid=(n_pad // pm,),
        in_specs=[
            pl.BlockSpec((pm, in_feats), lambda i: (i, 0)),
            pl.BlockSpec((in_feats, f_pad), lambda i: (0, 0)),
            pl.BlockSpec((pm, 1), lambda i: (i, 0)),
        ],
        out_specs=pl.BlockSpec((pm, f_pad), lambda i: (i, 0)),
        compiler_params=pltpu.CompilerParams(
            dimension_semantics=("parallel",),
            vmem_limit_bytes=vmem_limit),
    )(h_p, w_p, norm_p)

    # ---- aggregation: out = relu((A @ msg) * norm_dst + bias) --------------
    msg_bytes = n_pad * f_pad * 2
    if msg_resident is None:
        # Budget assuming double-buffered everything (worst case) + headroom.
        agg_vmem = (2 * msg_bytes            # resident msg
                    + 2 * tm * tk * 2        # A tiles (bf16)
                    + 2 * tm * f_pad * 4)    # resident f32 output block
        msg_resident = agg_vmem <= (vmem_limit * 3) // 4

    if msg_resident:
        msg_spec = pl.BlockSpec((n_pad, f_pad), lambda i, k: (0, 0))
        agg_kernel = _agg_kernel_resident
    else:
        msg_spec = pl.BlockSpec((tk, f_pad), lambda i, k: (k, 0))
        agg_kernel = _agg_kernel_tiled

    out_p = pl.pallas_call(
        agg_kernel,
        out_shape=jax.ShapeDtypeStruct((n_pad, f_pad), jnp.float32),
        grid=(n_pad // tm, n_pad // tk),
        in_specs=[
            pl.BlockSpec((tm, tk), lambda i, k: (i, k)),      # A[dst, src]
            msg_spec,                                          # msg[src]
            pl.BlockSpec((tm, 1), lambda i, k: (i, 0)),        # norm_dst
            pl.BlockSpec((1, f_pad), lambda i, k: (0, 0)),     # bias
        ],
        out_specs=pl.BlockSpec((tm, f_pad), lambda i, k: (i, 0)),
        compiler_params=pltpu.CompilerParams(
            dimension_semantics=("parallel", "arbitrary"),
            vmem_limit_bytes=vmem_limit),
    )(adj_p, msg, norm_p, bias_p)

    return out_p[:n, :out_feats]


def gcn_layer_reference(h, weight, adj, norm, bias):
    """Pure-JAX f32 reference for correctness check."""
    xw = h @ weight
    msg = xw * norm
    agg = (adj @ msg) * norm
    return jnp.maximum(agg + bias, 0.0)


if __name__ == "__main__":
    key = jax.random.PRNGKey(0)
    k_h, k_w, k_b, k_adj = jax.random.split(key, 4)

    # Small, forward-consistent shapes (padding 300 -> 384 nodes).
    N = 300
    in_feats = 16
    out_feats = 8

    # Node features.
    h = jax.random.normal(k_h, (N, in_feats), dtype=jnp.float32)

    # Parameters, initialized like the PyTorch module (uniform(-stdv, stdv)).
    stdv_w = 1.0 / math.sqrt(out_feats)            # weight.size(1)
    weight = jax.random.uniform(
        k_w, (in_feats, out_feats), minval=-stdv_w, maxval=stdv_w,
        dtype=jnp.float32)
    stdv_b = 1.0 / math.sqrt(out_feats)            # bias.size(0)
    bias = jax.random.uniform(
        k_b, (1, out_feats), minval=-stdv_b, maxval=stdv_b, dtype=jnp.float32)

    # Deterministic synthetic graph: dense adjacency A[dst, src], no self loops.
    adj = jax.random.bernoulli(k_adj, p=0.1, shape=(N, N))
    adj = adj.at[jnp.arange(N), jnp.arange(N)].set(False)
    adj = adj.astype(jnp.float32)

    # DGL-style symmetric norm: in_degree^{-1/2}, inf -> 0.
    in_deg = adj.sum(axis=1)
    norm = jnp.where(in_deg > 0, 1.0 / jnp.sqrt(jnp.maximum(in_deg, 1.0)), 0.0)
    norm = norm.reshape(N, 1).astype(jnp.float32)

    ref = gcn_layer_reference(h, weight, adj, norm, bias)

    # bf16 h/W/msg/A with f32 MXU accumulation => bf16-level tolerance.
    TOL = dict(atol=3e-2, rtol=3e-2)

    # 1) Default config: big tiles, adjacency prepared once (hoisted), resident msg.
    adj_prep = prepare_adjacency(adj)              # reuse across layers / steps
    out = gcn_layer_forward(h, weight, adj_prep, norm, bias)
    out = jax.block_until_ready(out)
    assert out.shape == (N, out_feats)
    assert jnp.allclose(out, ref, **TOL), "mismatch (default config)"

    # 2) Small tiles -> multi (dst, src) grid; resident msg with in-kernel slicing.
    adj_small = prepare_adjacency(adj, dst_tile=128, src_tile=128)
    out2 = gcn_layer_forward(h, weight, adj_small, norm, bias,
                             dst_tile=128, src_tile=128)
    out2 = jax.block_until_ready(out2)
    assert jnp.allclose(out2, ref, **TOL), "mismatch (small tiles, resident msg)"

    # 3) Same grid, tiled-msg fallback path (used when msg would not fit VMEM).
    out3 = gcn_layer_forward(h, weight, adj_small, norm, bias,
                             dst_tile=128, src_tile=128, msg_resident=False)
    out3 = jax.block_until_ready(out3)
    assert jnp.allclose(out3, ref, **TOL), "mismatch (small tiles, tiled msg)"

    print("KERNEL_OK")
</pallas_src>

<mosaic_0001>
module attributes {stable_mosaic.version = 11 : i64} {
  func.func @_proj_kernel(%arg0: i32, %arg1: memref<128x16xbf16, #tpu.memory_space<vmem>>, %arg2: memref<16x128xbf16, #tpu.memory_space<vmem>>, %arg3: memref<128x1xf32, #tpu.memory_space<vmem>>, %arg4: memref<128x128xbf16, #tpu.memory_space<vmem>>) attributes {dimension_semantics = [#tpu.dimension_semantics<parallel>], iteration_bounds = array<i64: 3>, scalar_prefetch = 0 : i64, scratch_operands = 0 : i64, tpu.core_type = #tpu.core_type<tc>, window_params = [{transform_indices = @transform_0, window_bounds = array<i64: 128, 16>}, {pipeline_mode = #tpu.pipeline_mode<synchronous>, transform_indices = @transform_1, window_bounds = array<i64: 16, 128>}, {transform_indices = @transform_2, window_bounds = array<i64: 128, 1>}, {transform_indices = @transform_3, window_bounds = array<i64: 128, 128>}]} {
    %c0 = arith.constant 0 : index
    %c0_0 = arith.constant 0 : index
    %0 = vector.load %arg1[%c0, %c0_0] : memref<128x16xbf16, #tpu.memory_space<vmem>>, vector<128x16xbf16>
    %c0_1 = arith.constant 0 : index
    %c0_2 = arith.constant 0 : index
    %1 = vector.load %arg2[%c0_1, %c0_2] : memref<16x128xbf16, #tpu.memory_space<vmem>>, vector<16x128xbf16>
    %cst = arith.constant dense<0.000000e+00> : vector<128x128xf32>
    %2 = tpu.matmul %0, %1, %cst {dimension_numbers = #tpu.dot_dimension_numbers<[1], [0], [0], [1], [0, 0, 1, 1], [], []>} : vector<128x16xbf16>, vector<16x128xbf16>, vector<128x128xf32> -> vector<128x128xf32>
    %c0_3 = arith.constant 0 : index
    %c0_4 = arith.constant 0 : index
    %3 = vector.load %arg3[%c0_3, %c0_4] : memref<128x1xf32, #tpu.memory_space<vmem>>, vector<128x1xf32>
    %4 = vector.broadcast %3 : vector<128x1xf32> to vector<128x128xf32>
    %5 = arith.mulf %2, %4 : vector<128x128xf32>
    %6 = arith.truncf %5 : vector<128x128xf32> to vector<128x128xbf16>
    %c0_5 = arith.constant 0 : index
    %c0_6 = arith.constant 0 : index
    %7 = vector.load %arg4[%c0_5, %c0_6] : memref<128x128xbf16, #tpu.memory_space<vmem>>, vector<128x128xbf16>
    tpu.vector_store %arg4[%c0_5, %c0_6], %6 {strides = array<i32>} : memref<128x128xbf16, #tpu.memory_space<vmem>>, vector<128x128xbf16>,
    return
  }
  func.func @transform_0(%arg0: i32) -> (i32, i32) {
    %c0_i32 = arith.constant 0 : i32
    %c0_i32_0 = arith.constant 0 : i32
    return %arg0, %c0_i32 : i32, i32
  }
  func.func @transform_1(%arg0: i32) -> (i32, i32) {
    %c0_i32 = arith.constant 0 : i32
    %c0_i32_0 = arith.constant 0 : i32
    %c0_i32_1 = arith.constant 0 : i32
    return %c0_i32, %c0_i32_0 : i32, i32
  }
  func.func @transform_2(%arg0: i32) -> (i32, i32) {
    %c0_i32 = arith.constant 0 : i32
    %c0_i32_0 = arith.constant 0 : i32
    return %arg0, %c0_i32 : i32, i32
  }
  func.func @transform_3(%arg0: i32) -> (i32, i32) {
    %c0_i32 = arith.constant 0 : i32
    %c0_i32_0 = arith.constant 0 : i32
    return %arg0, %c0_i32 : i32, i32
  }
}

</mosaic_0001>

<bundles_post_ra>
// kernel: tpu_custom_call.1
= control target key start
LH: loop header
LB: loop body
LE: loop exit
PB: predicated region body
PF: predicated region fallthrough
CT: control target
= control target key end

     0   :  { %8 = vsyncpa [#allocation3], 0  ;;  %s1088_s0 = inlined_call_operand.vmem [shape: bf16[384,16], index: 0, kind: input, shape index: {}]   ;;  %s1089_s1 = inlined_call_operand.vmem [shape: bf16[16,128], index: 1, kind: input, shape index: {}]   ;;  %s1090_s2 = inlined_call_operand.vmem [shape: f32[384,1], index: 2, kind: input, shape index: {}]   ;;  %s1091_s3 = inlined_call_operand.hbm [shape: bf16[384,128], index: 3, kind: output, shape index: {}]  }
   0x1   :  { %10 = vsyncpa [#allocation3 + $0x1], 0  ;;  %s940_s12 = smov 0   ;;  %s942_s13 = smov 0  }
   0x2   :  { %s944_s14 = smov 0   ;;  %s946_s15 = smov 0  }
   0x3 LB: > { %s961_s16 = sadd.s32 4294967295, %s914_s15   ;;  %s661_s17 = sadd.s32 4294967294, %s914_s15   ;;  %s914_s15 = sphi %s946_s15, %s1097_s15   ;;  %s910_s14 = sphi %s944_s14, %s1096_s14   ;;  %s906_s13 = sphi %s942_s13, %s1095_s13   ;;  %s902_s12 = sphi %s940_s12, %s1094_s12  }
   0x4   : > { %s965_s18 = sadd.s32 1, %s914_s15   ;;  %s96_s19 = sadd.s32 1, %s910_s14 }
   0x5   : > { %s93_s20 = ssub.s32 %s914_s15, %s965_s18  ;;  %p106_p0 = scmp.ne.s32.totalorder %s910_s14, %s906_s13 }
   0x6   : > { %p94_p1 = scmp.eq.s32.totalorder %s93_s20, 0  ;;  %p107_p2 = scmp.eq.s32.totalorder %s961_s16, 2 }
   0x7   : > { %p112_p3 = scmp.ne.s32.totalorder %s906_s13, %s902_s12  ;;  %p113_p4 = scmp.eq.s32.totalorder %s661_s17, 2 }
   0x8   : > { %s976_s21 = scalar_select %p94_p1, %s910_s14, %s96_s19  }
   0x9   : > { %p978_p5 = por %p107_p2, %p106_p0  ;;  %p982_p6 = por %p113_p4, %p112_p3 }
   0xa   : > { %p664_p7 = scmp.ge.s32.totalorder %s914_s15, 1  ;;  %p152_p8 = scmp.lt.s32.totalorder %s914_s15, 4 }
   0xc   : > { %p153_p9 = pnand %p664_p7, %p152_p8 }
   0xd   : > { %s666_s26 = sshll.u32 (!%p153_p9), %s961_s16, 4  ;;  %s178_s8 = sand.u32 (!%p153_p9), 1, %s906_s13  }
   0xe   : > { %156 = sbr.rel (%p153_p9) target bundleno = 250 (0xfa), region = 32  ;;  %p182_p10 = scmp.lt.s32.totalorder (!%p153_p9), %s666_s26, 47 }
   0xf   : > { %s665_s9 = sshll.u32 (!%p153_p9), %s178_s8, 6  ;;  %s724_s11 = sshll.u32 (!%p153_p9), %s961_s16, 10 }
  0x10   : > { %s1027_s10 = scalar_lea.vmem (!%p153_p9), [#allocation2], %s665_s9  ;;  %s1039_s24 = scalar_lea.hbm (!%p153_p9), %s1091_s3, %s724_s11 }
  0x11   : > { %s587_s17 = sshll.u32 (!%p153_p9), %s1027_s10, 4  ;;  %s1048_s16 = scalar_lea.sflag (!%p153_p9), [#allocation3], %s178_s8  ;;  %s1041_s17 = int_to_ptr.vmem [resolvable:$true] %s587_s17 }
  0x12   : > { %s854_s25 = scalar_lea.vmem (!%p153_p9), %s1041_s17, 1024 }
  0x13   : > { %v845_v0 = vld [vmem:[%s1089_s1] sm:$0xff]   ;;  %s1099_s26 = smov (!%p182_p10, %s666_s26), 47  ;;  %v916_v1 = vmov 0   ;;  %vm259_vm0 = vcmask 130048   ;;  %p855_p11 = scmp.ne.s32.totalorder %s1041_s17, %s854_s25 }
  0x14   : > { %781 = vmatprep.subr.bf16.mxu0 %v845_v0  ;;  %799 = vmatprep.subr.bf16.mxu1 %v845_v0  ;;  %s667_s27 = sshll.u32 %s1099_s26, 2  ;;  %s669_s4 = sshll.u32 %s1099_s26, 3 }
  0x15   : > { %782 = vmatpush3.bf16.msra.mxu0 %v845_v0  ;;  %800 = vmatpush3.bf16.msra.mxu1 %v845_v0  ;;  %s185_s30 = scalar_lea.vmem %s1088_s0, %s667_s27  ;;  %s1002_s7 = scalar_lea.vmem %s1090_s2, %s669_s4 }
  0x16   : > { %844 = vset.pattern.permute.xlu1 %v916_v1  ;;  %843 = vset.pattern.permute.xlu0 %v916_v1  ;;  %v846_v2 = vld [vmem:[%s185_s30] sm:$0xff]   ;;  %v848_v4 = vld [vmem:[%s185_s30 + $0x8] sm:$0xff]   ;;  %v850_v6 = vld [vmem:[%s185_s30 + $0x10] sm:$0xff]   ;;  %p856_p12 = pnand %p855_p11, %p978_p5  ;;  %s917_s26 = smov [#allocation2]  }
  0x17   : > { %v847_v3 = vld [vmem:[%s185_s30 + $0x20] sm:$0xff]   ;;  %783 = vmatprep.mubr.msk.bf16.mxu0 %vm259_vm0, %v846_v2  ;;  %v849_v5 = vld [vmem:[%s185_s30 + $0x28] sm:$0xff]   ;;  %v851_v7 = vld [vmem:[%s185_s30 + $0x30] sm:$0xff]   ;;  %s858_s27 = sshll.u32 %s917_s26, 4  ;;  %s859_s27 = int_to_ptr.vmem [resolvable:$false] %s858_s27 }
  0x18   : > { %791 = vmatprep.mubr.msk.bf16.mxu1 %vm259_vm0, %v847_v3  ;;  %784 = vmatmul.mubr.msk.bf16.vlgmr.msra.gmra.mxu0 %vm259_vm0, %v848_v4  ;;  %v852_v8 = vld [vmem:[%s185_s30 + $0x18] sm:$0xff]   ;;  %v383_v9 = vld [vmem:[%s1002_s7 + $0x10] sm:$0xff]  ;;  %v381_v10 = vld [vmem:[%s1002_s7] sm:$0xff]  ;;  %p857_p13 = pneg %p856_p12  ;;  %s860_s28 = scalar_lea.vmem %s859_s27, 2048 }
  0x19   : > { %792 = vmatmul.mubr.msk.bf16.vlgmr.msra.gmra.mxu1 %vm259_vm0, %v849_v5  ;;  %787 = vmatprep.mubr.msk.bf16.mxu0 %vm259_vm0, %v850_v6  ;;  %v853_v11 = vld [vmem:[%s185_s30 + $0x38] sm:$0xff]   ;;  %v382_v13 = vld [vmem:[%s1002_s7 + $0x8] sm:$0xff]  ;;  %v385_v15 = vld [vmem:[%s1002_s7 + $0x20] sm:$0xff]  ;;  %p861_p0 = scmp.lt.s32.totalorder %s1041_s17, %s859_s27  ;;  %p862_p1 = scmp.lt.s32.totalorder %s860_s28, %s854_s25 }
  0x1a   : > { %795 = vmatprep.mubr.msk.bf16.mxu1 %vm259_vm0, %v851_v7  ;;  %409 = vperm.xlu1 %844, %v383_v9   ;;  %v384_v12 = vld [vmem:[%s1002_s7 + $0x18] sm:$0xff]  ;;  %v386_v14 = vld [vmem:[%s1002_s7 + $0x28] sm:$0xff]  ;;  %v387_v17 = vld [vmem:[%s1002_s7 + $0x30] sm:$0xff] }
  0x1b   : > { %399 = vperm.xlu0 %843, %v381_v10   ;;  %v388_v16 = vld [vmem:[%s1002_s7 + $0x38] sm:$0xff]  ;;  %v390_v18 = vld [vmem:[%s1002_s7 + $0x48] sm:$0xff]  ;;  %v389_v19 = vld [vmem:[%s1002_s7 + $0x40] sm:$0xff]  ;;  %p863_p2 = por %p862_p1, %p861_p0 }
  0x1c   : > { %v392_v20 = vld [vmem:[%s1002_s7 + $0x58] sm:$0xff]  ;;  %v391_v21 = vld [vmem:[%s1002_s7 + $0x50] sm:$0xff]  ;;  %v394_v22 = vld [vmem:[%s1002_s7 + $0x68] sm:$0xff] }
  0x1d   : > { %v393_v23 = vld [vmem:[%s1002_s7 + $0x60] sm:$0xff]  ;;  %v396_v24 = vld [vmem:[%s1002_s7 + $0x78] sm:$0xff]  ;;  %v395_v25 = vld [vmem:[%s1002_s7 + $0x70] sm:$0xff]  ;;  %p864_p3 = pnand %p863_p2, %p857_p13 }
  0x1e   : > { %414 = vperm.xlu1 %844, %v384_v12  }
  0x1f   : > { %404 = vperm.xlu0 %843, %v382_v13  }
  0x20   : > { %788 = vmatmul.mubr.msk.bf16.gmra.mxu0 %vm259_vm0, %v852_v8 }
  0x21   : > { %796 = vmatmul.mubr.msk.bf16.gmra.mxu1 %vm259_vm0, %v853_v11 }
  0x22   : > { %424 = vperm.xlu1 %844, %v386_v14  }
  0x23   : > { %419 = vperm.xlu0 %843, %v385_v15  }
  0x26   : > { %434 = vperm.xlu1 %844, %v388_v16  }
  0x27   : > { %429 = vperm.xlu0 %843, %v387_v17  }
  0x2a   : > { %444 = vperm.xlu1 %844, %v390_v18  }
  0x2b   : > { %439 = vperm.xlu0 %843, %v389_v19  }
  0x2e   : > { %454 = vperm.xlu1 %844, %v392_v20  }
  0x2f   : > { %449 = vperm.xlu0 %843, %v391_v21  }
  0x32   : > { %464 = vperm.xlu1 %844, %v394_v22  }
  0x33   : > { %459 = vperm.xlu0 %843, %v393_v23  }
  0x36   : > { %474 = vperm.xlu1 %844, %v396_v24  }
  0x37   : > { %469 = vperm.xlu0 %843, %v395_v25  }
  0x95   : > { %v410_v26 = vpop.permute.xlu1 %409 }
  0x96   : > { %v400_v27 = vpop.permute.xlu0 %399 }
  0x99   : > { %v415_v28 = vpop.permute.xlu1 %414 }
  0x9a   : > { %v405_v29 = vpop.permute.xlu0 %404 }
  0x9d   : > { %v425_v30 = vpop.permute.xlu1 %424 }
  0x9e   : > { %v420_v31 = vpop.permute.xlu0 %419 }
  0xa1   : > { %v435_v32 = vpop.permute.xlu1 %434 }
  0xa2   : > { %v430_v33 = vpop.permute.xlu0 %429 }
  0xa5   : > { %v445_v34 = vpop.permute.xlu1 %444 }
  0xa6   : > { %v440_v35 = vpop.permute.xlu0 %439 }
  0xa9   : > { %v455_v36 = vpop.permute.xlu1 %454 }
  0xaa   : > { %v450_v38 = vpop.permute.xlu0 %449 }
  0xad   : > { %v465_v46 = vpop.permute.xlu1 %464 }
  0xae   : > { %v460_v50 = vpop.permute.xlu0 %459 }
  0xb1   : > { %v475_v0 = vpop.permute.xlu1 %474 }
  0xb2   : > { %v470_v2 = vpop.permute.xlu0 %469 }
  0xd8   : > { %v785_v37 = vpop.f32.mrf.mxu0 }
  0xd9   : > { %v793_v39 = vpop.f32.mrf.mxu1  ;;  %v479_v43 = vmul.f32 %v785_v37, %v410_v26 }
  0xda   : > { %v318_v40 = vpop.f32.mrf.mxu0  ;;  %v487_v47 = vmul.f32 %v793_v39, %v450_v38 }
  0xdb   : > { %v350_v41 = vpop.f32.mrf.mxu1  ;;  %v477_v51 = vmul.f32 %v400_v27, %v318_v40 }
  0xdc   : > { %v786_v42 = vpop.f32.mrf.mxu0  ;;  %v485_v55 = vmul.f32 %v440_v35, %v350_v41 }
  0xdd   : > { %v480_v44 = vmul.f32 %v786_v42, %v415_v28  ;;  %v794_v45 = vpop.f32.mrf.mxu1 }
  0xde   : > { %v488_v48 = vmul.f32 %v794_v45, %v455_v36  ;;  %v321_v49 = vpop.f32.mrf.mxu0 }
  0xdf   : > { %v733_v52 = vpack.c.bf16 %v480_v44, %v479_v43  ;;  %v478_v53 = vmul.f32 %v405_v29, %v321_v49  ;;  %v353_v54 = vpop.f32.mrf.mxu1 }
  0xe0   : > { %v753_v56 = vpack.c.bf16 %v488_v48, %v487_v47  ;;  %v486_v57 = vmul.f32 %v445_v34, %v353_v54  ;;  %v789_v58 = vpop.f32.mrf.mxu0 }
  0xe1   : > { %765 = vst [vmem:[%s1027_s10 + $0x8] sm:$0xff] %v733_v52   ;;  %v728_v59 = vpack.c.bf16 %v478_v53, %v477_v51  ;;  %v797_v60 = vpop.f32.mrf.mxu1  ;;  %v483_v3 = vmul.f32 %v789_v58, %v430_v33 }
  0xe2   : > { %769 = vst [vmem:[%s1027_s10 + $0x28] sm:$0xff] %v753_v56   ;;  %v748_v61 = vpack.c.bf16 %v486_v57, %v485_v55  ;;  %v334_v62 = vpop.f32.mrf.mxu0  ;;  %v491_v6 = vmul.f32 %v797_v60, %v470_v2 }
  0xe3   : > { %729 = vst [vmem:[%s1027_s10] sm:$0xff] %v728_v59   ;;  %v366_v63 = vpop.f32.mrf.mxu1  ;;  %v481_v9 = vmul.f32 %v420_v31, %v334_v62 }
  0xe4   : > { %768 = vst [vmem:[%s1027_s10 + $0x20] sm:$0xff] %v748_v61   ;;  %v790_v1 = vpop.f32.mrf.mxu0  ;;  %v489_v13 = vmul.f32 %v460_v50, %v366_v63 }
  0xe5   : > { %v484_v4 = vmul.f32 %v790_v1, %v435_v32  ;;  %v798_v5 = vpop.f32.mrf.mxu1 }
  0xe6   : > { %v492_v7 = vmul.f32 %v798_v5, %v475_v0  ;;  %v337_v8 = vpop.f32.mrf.mxu0 }
  0xe7   : > { %v743_v10 = vpack.c.bf16 %v484_v4, %v483_v3  ;;  %v482_v11 = vmul.f32 %v425_v30, %v337_v8  ;;  %v369_v12 = vpop.f32.mrf.mxu1 }
  0xe8   : > { %v763_v14 = vpack.c.bf16 %v492_v7, %v491_v6  ;;  %v490_v15 = vmul.f32 %v465_v46, %v369_v12 }
  0xe9   : > { %767 = vst [vmem:[%s1027_s10 + $0x18] sm:$0xff] %v743_v10   ;;  %v738_v16 = vpack.c.bf16 %v482_v11, %v481_v9 }
  0xea   : > { %771 = vst [vmem:[%s1027_s10 + $0x38] sm:$0xff] %v763_v14   ;;  %v758_v17 = vpack.c.bf16 %v490_v15, %v489_v13 }
  0xeb   : > { %766 = vst [vmem:[%s1027_s10 + $0x10] sm:$0xff] %v738_v16  }
  0xec   : > { %770 = vst [vmem:[%s1027_s10 + $0x30] sm:$0xff] %v758_v17  }
  0xed   : > { %867 = shalt.err (!%p864_p3)
}
  0xee   : > { %s868_s29 = scalar_lea.hbm %s1039_s24, 1024  ;;  %s872_s5 = scalar_lea.hbm %s1091_s3, 3072 }
  0xef   : > { %p869_p4 = scmp.ne.s32.totalorder %s1039_s24, %s868_s29  ;;  %p873_p9 = scmp.lt.s32.totalorder %s1039_s24, %s1091_s3 }
  0xf0   : > { %p874_p10 = scmp.lt.s32.totalorder %s872_s5, %s868_s29 }
  0xf1   : > { %p870_p7 = pnand %p869_p4, %p978_p5 }
  0xf2   : > { %p875_p11 = por %p874_p10, %p873_p9 }
  0xf3   : > { %p871_p8 = pneg %p870_p7 }
  0xf5   : > { %p876_p12 = pnand %p875_p11, %p871_p8 }
  0xf7   : > { %879 = shalt.err (!%p876_p12)
}
  0xf8   : > { %s918_s8 = smov 64   ;;  %s919_s9 = smov 4  }
  0xf9   : > { %801 = dma.vmem_to_hbm [thread:$0]  (%p978_p5), %s1041_s17, 1024, %s1039_s24, %s1048_s16, %s918_s8, %s918_s8, %s919_s9  }
  0xfa PF: > { %p807_p13 = scmp.ge.s32.totalorder %s914_s15, 2  ;;  %s602_s10 = sand.u32 1, %s902_s12  }
  0xfb   : > { %s603_s11 = scalar_lea.sflag [#allocation3], %s602_s10 }
  0xfc   : > { %p804_p0 = pnand %p807_p13, %p982_p6 }
  0xfe   : > { %p805_p1 = pneg %p804_p0 }
 0x100   : > { %897 = dma.done.wait (%p805_p1), %s603_s11, 1024  }
 0x101   : > { %899 = vsyncadd (%p805_p1), %s603_s11, 4294966272  ;;  %p13_p2 = scmp.ge.s32.totalorder %s965_s18, 5   ;;  %s1094_s12 = smov %s906_s13 }
 0x102   : > { %s1095_s13 = smov %s910_s14  ;;  %s1096_s14 = smov %s976_s21 }
 0x103   : > { %s1097_s15 = smov %s965_s18  ;;  %15 = sbr.rel (!%p13_p2) target bundleno = 3 (0x3), region = 70 }
 0x108   :  { %608 = vsyncpa [#allocation3], 1 }
 0x109   :  { %610 = vsyncpa [#allocation3 + $0x1], 1 }

</bundles_post_ra>
